<compile_context>
chip_gen: v7x
topology: tpu7x:2x2x1
jax: 0.10.0
libtpu: 0.0.40
codegen_flags: <defaults>
</compile_context>

<pallas_src>
import jax
import jax.numpy as jnp
import numpy as np
from jax import lax
from jax.experimental import pallas as pl
from jax.experimental.pallas import tpu as pltpu

IGNORE_INDEX = 255


def _interp_matrix(out_size: int, in_size: int) -> jnp.ndarray:
    """Row-stochastic (out_size, in_size) bilinear matrix, align_corners=True."""
    if out_size == 1:
        src = jnp.zeros((1,), jnp.float32)
    else:
        src = jnp.arange(out_size, dtype=jnp.float32) * (
            (in_size - 1) / (out_size - 1)
        )
    i0 = jnp.clip(jnp.floor(src).astype(jnp.int32), 0, in_size - 1)
    i1 = jnp.minimum(i0 + 1, in_size - 1)
    w1 = src - i0.astype(jnp.float32)
    w0 = 1.0 - w1
    eye = jnp.eye(in_size, dtype=jnp.float32)
    return w0[:, None] * eye[i0] + w1[:, None] * eye[i1]


def _make_ce_kernel(kc: int, n_chunks: int):
    """Build the per-(image, H-band) cross-entropy kernel.

    kc:       channels processed per streaming iteration (chunk size)
    n_chunks: C // kc
    """

    def kernel(preds_ref, ry_ref, rxt_ref, tgt_ref, out_ref, tmp_ref):
        # preds_ref: (1, C*h_in, w_in) bf16  -- one image, flattened in wrapper
        # ry_ref:    (Hb, h_in)        bf16  -- one H band of the Ry matrix
        # rxt_ref:   (w_in, W)         bf16
        # tgt_ref:   (1, Hb, W)        int32
        # out_ref:   (1, 1, 8, 128)    f32   -- per-(image, band) partials
        # tmp_ref:   (C, h_in, W)      bf16  -- VMEM scratch, reused across bands
        C, h_in, W = tmp_ref.shape
        Hb = ry_ref.shape[0]

        # Rx-side interpolation: ONE fused MXU matmul per image, computed only
        # on the first band and reused across the inner "arbitrary" band axis.
        # The f32 -> bf16 cast (and any reshape relayout when h_in % 8 != 0)
        # runs once per image, amortized over all bands.
        @pl.when(pl.program_id(1) == 0)
        def _():
            t = jnp.dot(preds_ref[0], rxt_ref[...],
                        preferred_element_type=jnp.float32)       # (C*h_in, W)
            tmp_ref[...] = t.astype(jnp.bfloat16).reshape(C, h_in, W)

        ry = ry_ref[...]                       # (Hb, h_in) bf16, hoisted once
        tgt = tgt_ref[0]                       # (Hb, W) int32

        m0 = jnp.full((Hb, W), -jnp.inf, jnp.float32)
        s0 = jnp.zeros((Hb, W), jnp.float32)
        p0 = jnp.zeros((Hb, W), jnp.float32)

        def chunk_body(ci, carry):
            m, s, picked = carry
            base = ci * kc
            # kc upsampled channel maps for this chunk (one Ry matmul each).
            ups = [
                jnp.dot(ry, tmp_ref[base + k],
                        preferred_element_type=jnp.float32)        # (Hb, W) f32
                for k in range(kc)
            ]
            # Chunk-local max / exp-sum / target-logit pick.
            m_c = ups[0]
            for k in range(1, kc):
                m_c = jnp.maximum(m_c, ups[k])
            if kc == 1:
                s_c = jnp.ones((Hb, W), jnp.float32)
            else:
                s_c = jnp.exp(ups[0] - m_c)
                for k in range(1, kc):
                    s_c = s_c + jnp.exp(ups[k] - m_c)
            for k in range(kc):
                picked = picked + jnp.where(tgt == base + k, ups[k], 0.0)
            # One-exp merge of carried (m, s) with chunk (m_c, s_c): halves the
            # EUP work vs the two-exp online-LSE form, and the carried state is
            # only touched once per chunk (amortizes vst traffic).
            e = jnp.exp(-jnp.abs(m_c - m))
            s = jnp.where(m_c > m, s * e + s_c, s + s_c * e)
            m = jnp.maximum(m, m_c)
            return m, s, picked

        m, s, picked = lax.fori_loop(0, n_chunks, chunk_body, (m0, s0, p0),
                                     unroll=2)

        lse = m + jnp.log(s)                                       # (Hb, W)
        valid = tgt != IGNORE_INDEX
        loss_sum = jnp.sum(jnp.where(valid, lse - picked, 0.0))
        cnt = jnp.sum(valid.astype(jnp.float32))

        # Disjoint lane-dense (8,128) partial block per (image, band) grid cell:
        # [0,0] = per-cell loss sum, [0,1] = per-cell valid-pixel count.
        row = lax.broadcasted_iota(jnp.int32, (8, 128), 0)
        col = lax.broadcasted_iota(jnp.int32, (8, 128), 1)
        out_ref[0, 0] = jnp.where(
            (row == 0) & (col == 0), loss_sum,
            jnp.where((row == 0) & (col == 1), cnt, 0.0))

    return kernel


def _pick_channel_chunk(C: int) -> int:
    """2-4 channels per streaming iteration (must divide C)."""
    for kc in (4, 3, 2):
        if C % kc == 0:
            return kc
    return 1


def _vmem_limit_bytes() -> int:
    """Generation-dependent scoped-VMEM request (conservative fallback)."""
    try:
        cap = int(pltpu.get_tpu_info().vmem_capacity_bytes)
    except Exception:  # pragma: no cover - info query unavailable
        cap = 0
    if cap >= 100 * 1024 * 1024:          # v5e / v6e: 128 MiB physical VMEM
        return 80 * 1024 * 1024
    return 32 * 1024 * 1024               # v7x (64 MiB physical) / unknown


def _pick_h_band(H: int, W: int, vmem_limit: int) -> int:
    """Largest multiple-of-8 divisor of H whose per-band f32 state fits a budget."""
    if H % 8 != 0:
        return H  # (8,128) rule: band block must be 8-divisible or full-extent
    # ~12 live (h_band, W) f32-equivalent arrays: chunk ups, m/s/picked, lse,
    # masks, plus the double-buffered int32 target block.
    budget = max(vmem_limit // 3, 1 << 20)
    per_row = max(12 * 4 * W, 1)
    max_rows = max(8, budget // per_row)
    best = 8
    for d in range(8, H + 1, 8):
        if H % d == 0 and d <= max_rows:
            best = d
    return best


def criterion_all_multiloss(preds, target, h_band=None):
    """preds: (N, C, h_in, w_in) f32, target: (N, H, W) int -> scalar mean CE loss."""
    N, C, h_in, w_in = preds.shape
    _, H, W = target.shape

    vmem_limit = _vmem_limit_bytes()

    # bf16 MXU operands (f32 accumulation inside the kernel).
    ry = _interp_matrix(H, h_in).astype(jnp.bfloat16)          # (H, h_in)
    rxt = _interp_matrix(W, w_in).T.astype(jnp.bfloat16)       # (w_in, W)
    # Flatten (C, h_in) in HBM so the fused Rx matmul sees a clean 2D layout
    # (no in-kernel reshape/relayout of the input block).
    preds_bf = preds.astype(jnp.bfloat16).reshape(N, C * h_in, w_in)
    # TODO(synk): target could be shipped as int16/uint8 to shrink its DMA
    # stream; kept int32 (minor — the kernel is compute-bound).
    target = target.astype(jnp.int32)

    if h_band is None:
        h_band = _pick_h_band(H, W, vmem_limit)
    assert H % h_band == 0 and (h_band % 8 == 0 or h_band == H)
    bands = H // h_band

    kc = _pick_channel_chunk(C)
    kernel = _make_ce_kernel(kc, C // kc)

    partials = pl.pallas_call(
        kernel,
        out_shape=jax.ShapeDtypeStruct((N, bands, 8, 128), jnp.float32),
        grid_spec=pltpu.PrefetchScalarGridSpec(
            num_scalar_prefetch=0,
            grid=(N, bands),                 # batch (parallel) x H-band (arbitrary)
            in_specs=[
                pl.BlockSpec((1, C * h_in, w_in), lambda i, j: (i, 0, 0)),
                pl.BlockSpec((h_band, h_in), lambda i, j: (j, 0)),
                pl.BlockSpec((w_in, W), lambda i, j: (0, 0)),
                pl.BlockSpec((1, h_band, W), lambda i, j: (i, j, 0)),
            ],
            out_specs=pl.BlockSpec((1, 1, 8, 128), lambda i, j: (i, j, 0, 0)),
            scratch_shapes=[pltpu.VMEM((C, h_in, W), jnp.bfloat16)],
        ),
        compiler_params=pltpu.CompilerParams(
            dimension_semantics=("parallel", "arbitrary"),
            vmem_limit_bytes=vmem_limit,
        ),
    )(preds_bf, ry, rxt, target)

    loss_sum = jnp.sum(partials[:, :, 0, 0])
    # Per-cell counts are exact small integers in f32; reduce them as int32 so
    # the denominator stays exact past 2^24 total valid pixels.
    cnt = jnp.sum(partials[:, :, 0, 1].astype(jnp.int32))
    # NaN when every pixel is ignored — same as PyTorch's mean reduction.
    return loss_sum / cnt.astype(jnp.float32)


def _reference_loss(preds, target):
    """Pure-JAX f32 reference for validation."""
    N, C, h_in, w_in = preds.shape
    _, H, W = target.shape
    ry = _interp_matrix(H, h_in)
    rx = _interp_matrix(W, w_in)
    up = jnp.einsum("Hh,nchw,Ww->ncHW", ry, preds, rx)
    lse = jax.scipy.special.logsumexp(up, axis=1)                  # (N, H, W)
    tgt_clamped = jnp.clip(target, 0, C - 1)
    picked = jnp.take_along_axis(up, tgt_clamped[:, None], axis=1)[:, 0]
    valid = target != IGNORE_INDEX
    per_pixel = lse - picked
    return jnp.sum(jnp.where(valid, per_pixel, 0.0)) / jnp.sum(
        valid.astype(jnp.float32)
    )


if __name__ == "__main__":
    key = jax.random.PRNGKey(0)
    k1, k2, k3 = jax.random.split(key, 3)

    N, C = 2, 8
    h_in, w_in = 8, 8     # prediction spatial size (pre-interpolation)
    H, W = 16, 16         # target spatial size

    preds = jax.random.normal(k1, (N, C, h_in, w_in), jnp.float32)
    target = jax.random.randint(k2, (N, H, W), 0, C).astype(jnp.int32)
    ignore_mask = jax.random.uniform(k3, (N, H, W)) < 0.2
    target = jnp.where(ignore_mask, IGNORE_INDEX, target).astype(jnp.int32)

    ref = jax.block_until_ready(_reference_loss(preds, target))

    # Default band selection (single band at this size).
    loss = jax.block_until_ready(criterion_all_multiloss(preds, target))
    # bf16 matmul operands (vs the f32 reference) loosen the tolerance slightly.
    np.testing.assert_allclose(np.asarray(loss), np.asarray(ref),
                               rtol=2e-2, atol=2e-2)

    # Forced 8-row banding exercises the multi-band ("arbitrary" inner axis +
    # cached Rx scratch) code path.
    loss_banded = jax.block_until_ready(
        criterion_all_multiloss(preds, target, h_band=8))
    np.testing.assert_allclose(np.asarray(loss_banded), np.asarray(ref),
                               rtol=2e-2, atol=2e-2)

    print("KERNEL_OK")
</pallas_src>

<mosaic_0001>
module attributes {stable_mosaic.version = 11 : i64} {
  func.func @kernel(%arg0: i32, %arg1: i32, %arg2: memref<1x64x8xbf16, #tpu.memory_space<vmem>>, %arg3: memref<16x8xbf16, #tpu.memory_space<vmem>>, %arg4: memref<8x16xbf16, #tpu.memory_space<vmem>>, %arg5: memref<1x16x16xi32, #tpu.memory_space<vmem>>, %arg6: memref<1x1x8x128xf32, #tpu.memory_space<vmem>>, %arg7: memref<8x8x16xbf16, #tpu.memory_space<vmem>>) attributes {dimension_semantics = [#tpu.dimension_semantics<parallel>, #tpu.dimension_semantics<arbitrary>], iteration_bounds = array<i64: 2, 1>, scalar_prefetch = 0 : i64, scratch_operands = 1 : i64, tpu.core_type = #tpu.core_type<tc>, window_params = [{transform_indices = @transform_0, window_bounds = array<i64: 1, 64, 8>}, {transform_indices = @transform_1, window_bounds = array<i64: 16, 8>}, {pipeline_mode = #tpu.pipeline_mode<synchronous>, transform_indices = @transform_2, window_bounds = array<i64: 8, 16>}, {transform_indices = @transform_3, window_bounds = array<i64: 1, 16, 16>}, {transform_indices = @transform_4, window_bounds = array<i64: 1, 1, 8, 128>}]} {
    %c0_i32 = arith.constant 0 : i32
    %0 = arith.cmpi eq, %arg1, %c0_i32 : i32
    %1 = arith.extui %0 : i1 to i32
    %c0_i32_0 = arith.constant 0 : i32
    %2 = arith.cmpi ne, %1, %c0_i32_0 : i32
    scf.if %2 {
      %c0_70 = arith.constant 0 : index
      %c0_71 = arith.constant 0 : index
      %c0_72 = arith.constant 0 : index
      %188 = vector.load %arg2[%c0_70, %c0_71, %c0_72] : memref<1x64x8xbf16, #tpu.memory_space<vmem>>, vector<1x64x8xbf16>
      %189 = vector.shape_cast %188 : vector<1x64x8xbf16> to vector<64x8xbf16>
      %c0_73 = arith.constant 0 : index
      %c0_74 = arith.constant 0 : index
      %190 = vector.load %arg4[%c0_73, %c0_74] : memref<8x16xbf16, #tpu.memory_space<vmem>>, vector<8x16xbf16>
      %cst_75 = arith.constant dense<0.000000e+00> : vector<64x16xf32>
      %191 = tpu.matmul %189, %190, %cst_75 {dimension_numbers = #tpu.dot_dimension_numbers<[1], [0], [0], [1], [0, 0, 1, 1], [], []>} : vector<64x8xbf16>, vector<8x16xbf16>, vector<64x16xf32> -> vector<64x16xf32>
      %192 = arith.truncf %191 : vector<64x16xf32> to vector<64x16xbf16>
      %193 = vector.shape_cast %192 : vector<64x16xbf16> to vector<8x8x16xbf16>
      %c0_76 = arith.constant 0 : index
      %c0_77 = arith.constant 0 : index
      %c0_78 = arith.constant 0 : index
      %194 = vector.load %arg7[%c0_76, %c0_77, %c0_78] : memref<8x8x16xbf16, #tpu.memory_space<vmem>>, vector<8x8x16xbf16>
      tpu.vector_store %arg7[%c0_76, %c0_77, %c0_78], %193 {strides = array<i32>} : memref<8x8x16xbf16, #tpu.memory_space<vmem>>, vector<8x8x16xbf16>,
    } else {
    }
    %c0 = arith.constant 0 : index
    %c0_1 = arith.constant 0 : index
    %3 = vector.load %arg3[%c0, %c0_1] : memref<16x8xbf16, #tpu.memory_space<vmem>>, vector<16x8xbf16>
    %c0_2 = arith.constant 0 : index
    %c0_3 = arith.constant 0 : index
    %c0_4 = arith.constant 0 : index
    %4 = vector.load %arg5[%c0_2, %c0_3, %c0_4] : memref<1x16x16xi32, #tpu.memory_space<vmem>>, vector<1x16x16xi32>
    %5 = vector.shape_cast %4 : vector<1x16x16xi32> to vector<16x16xi32>
    %cst = arith.constant 0xFF800000 : f32
    %6 = vector.broadcast %cst : f32 to vector<16x16xf32>
    %cst_5 = arith.constant 0.000000e+00 : f32
    %7 = vector.broadcast %cst_5 : f32 to vector<16x16xf32>
    %cst_6 = arith.constant 0.000000e+00 : f32
    %8 = vector.broadcast %cst_6 : f32 to vector<16x16xf32>
    %c0_i32_7 = arith.constant 0 : i32
    %c4_i32 = arith.constant 4 : i32
    %9 = arith.muli %c0_i32_7, %c4_i32 : i32
    %c0_i32_8 = arith.constant 0 : i32
    %10 = arith.addi %9, %c0_i32_8 : i32
    %11 = arith.index_cast %10 : i32 to index
    %c0_9 = arith.constant 0 : index
    %c0_10 = arith.constant 0 : index
    %12 = vector.load %arg7[%11, %c0_9, %c0_10] : memref<8x8x16xbf16, #tpu.memory_space<vmem>>, vector<1x8x16xbf16>
    %13 = vector.shape_cast %12 : vector<1x8x16xbf16> to vector<8x16xbf16>
    %cst_11 = arith.constant dense<0.000000e+00> : vector<16x16xf32>
    %14 = tpu.matmul %3, %13, %cst_11 {dimension_numbers = #tpu.dot_dimension_numbers<[1], [0], [0], [1], [0, 0, 1, 1], [], []>} : vector<16x8xbf16>, vector<8x16xbf16>, vector<16x16xf32> -> vector<16x16xf32>
    %c1_i32 = arith.constant 1 : i32
    %15 = arith.addi %9, %c1_i32 : i32
    %16 = arith.index_cast %15 : i32 to index
    %c0_12 = arith.constant 0 : index
    %c0_13 = arith.constant 0 : index
    %17 = vector.load %arg7[%16, %c0_12, %c0_13] : memref<8x8x16xbf16, #tpu.memory_space<vmem>>, vector<1x8x16xbf16>
    %18 = vector.shape_cast %17 : vector<1x8x16xbf16> to vector<8x16xbf16>
    %cst_14 = arith.constant dense<0.000000e+00> : vector<16x16xf32>
    %19 = tpu.matmul %3, %18, %cst_14 {dimension_numbers = #tpu.dot_dimension_numbers<[1], [0], [0], [1], [0, 0, 1, 1], [], []>} : vector<16x8xbf16>, vector<8x16xbf16>, vector<16x16xf32> -> vector<16x16xf32>
    %c2_i32 = arith.constant 2 : i32
    %20 = arith.addi %9, %c2_i32 : i32
    %21 = arith.index_cast %20 : i32 to index
    %c0_15 = arith.constant 0 : index
    %c0_16 = arith.constant 0 : index
    %22 = vector.load %arg7[%21, %c0_15, %c0_16] : memref<8x8x16xbf16, #tpu.memory_space<vmem>>, vector<1x8x16xbf16>
    %23 = vector.shape_cast %22 : vector<1x8x16xbf16> to vector<8x16xbf16>
    %cst_17 = arith.constant dense<0.000000e+00> : vector<16x16xf32>
    %24 = tpu.matmul %3, %23, %cst_17 {dimension_numbers = #tpu.dot_dimension_numbers<[1], [0], [0], [1], [0, 0, 1, 1], [], []>} : vector<16x8xbf16>, vector<8x16xbf16>, vector<16x16xf32> -> vector<16x16xf32>
    %c3_i32 = arith.constant 3 : i32
    %25 = arith.addi %9, %c3_i32 : i32
    %26 = arith.index_cast %25 : i32 to index
    %c0_18 = arith.constant 0 : index
    %c0_19 = arith.constant 0 : index
    %27 = vector.load %arg7[%26, %c0_18, %c0_19] : memref<8x8x16xbf16, #tpu.memory_space<vmem>>, vector<1x8x16xbf16>
    %28 = vector.shape_cast %27 : vector<1x8x16xbf16> to vector<8x16xbf16>
    %cst_20 = arith.constant dense<0.000000e+00> : vector<16x16xf32>
    %29 = tpu.matmul %3, %28, %cst_20 {dimension_numbers = #tpu.dot_dimension_numbers<[1], [0], [0], [1], [0, 0, 1, 1], [], []>} : vector<16x8xbf16>, vector<8x16xbf16>, vector<16x16xf32> -> vector<16x16xf32>
    %30 = arith.maximumf %14, %19 : vector<16x16xf32>
    %31 = arith.maximumf %30, %24 : vector<16x16xf32>
    %32 = arith.maximumf %31, %29 : vector<16x16xf32>
    %33 = arith.subf %14, %32 : vector<16x16xf32>
    %34 = math.exp %33 : vector<16x16xf32>
    %35 = arith.subf %19, %32 : vector<16x16xf32>
    %36 = math.exp %35 : vector<16x16xf32>
    %37 = arith.addf %34, %36 : vector<16x16xf32>
    %38 = arith.subf %24, %32 : vector<16x16xf32>
    %39 = math.exp %38 : vector<16x16xf32>
    %40 = arith.addf %37, %39 : vector<16x16xf32>
    %41 = arith.subf %29, %32 : vector<16x16xf32>
    %42 = math.exp %41 : vector<16x16xf32>
    %43 = arith.addf %40, %42 : vector<16x16xf32>
    %c0_i32_21 = arith.constant 0 : i32
    %44 = arith.addi %9, %c0_i32_21 : i32
    %45 = vector.broadcast %44 : i32 to vector<16x16xi32>
    %46 = arith.cmpi eq, %5, %45 : vector<16x16xi32>
    %cst_22 = arith.constant 0.000000e+00 : f32
    %47 = vector.broadcast %cst_22 : f32 to vector<16x16xf32>
    %48 = arith.select %46, %14, %47 : vector<16x16xi1>, vector<16x16xf32>
    %49 = arith.addf %8, %48 : vector<16x16xf32>
    %c1_i32_23 = arith.constant 1 : i32
    %50 = arith.addi %9, %c1_i32_23 : i32
    %51 = vector.broadcast %50 : i32 to vector<16x16xi32>
    %52 = arith.cmpi eq, %5, %51 : vector<16x16xi32>
    %cst_24 = arith.constant 0.000000e+00 : f32
    %53 = vector.broadcast %cst_24 : f32 to vector<16x16xf32>
    %54 = arith.select %52, %19, %53 : vector<16x16xi1>, vector<16x16xf32>
    %55 = arith.addf %49, %54 : vector<16x16xf32>
    %c2_i32_25 = arith.constant 2 : i32
    %56 = arith.addi %9, %c2_i32_25 : i32
    %57 = vector.broadcast %56 : i32 to vector<16x16xi32>
    %58 = arith.cmpi eq, %5, %57 : vector<16x16xi32>
    %cst_26 = arith.constant 0.000000e+00 : f32
    %59 = vector.broadcast %cst_26 : f32 to vector<16x16xf32>
    %60 = arith.select %58, %24, %59 : vector<16x16xi1>, vector<16x16xf32>
    %61 = arith.addf %55, %60 : vector<16x16xf32>
    %c3_i32_27 = arith.constant 3 : i32
    %62 = arith.addi %9, %c3_i32_27 : i32
    %63 = vector.broadcast %62 : i32 to vector<16x16xi32>
    %64 = arith.cmpi eq, %5, %63 : vector<16x16xi32>
    %cst_28 = arith.constant 0.000000e+00 : f32
    %65 = vector.broadcast %cst_28 : f32 to vector<16x16xf32>
    %66 = arith.select %64, %29, %65 : vector<16x16xi1>, vector<16x16xf32>
    %67 = arith.addf %61, %66 : vector<16x16xf32>
    %68 = arith.subf %32, %6 : vector<16x16xf32>
    %69 = math.absf %68 : vector<16x16xf32>
    %cst_29 = arith.constant 0.000000e+00 : f32
    %70 = vector.broadcast %cst_29 : f32 to vector<16x16xf32>
    %71 = arith.subf %70, %69 : vector<16x16xf32>
    %72 = math.exp %71 : vector<16x16xf32>
    %73 = arith.cmpf ogt, %32, %6 : vector<16x16xf32>
    %74 = arith.mulf %7, %72 : vector<16x16xf32>
    %75 = arith.addf %74, %43 : vector<16x16xf32>
    %76 = arith.mulf %43, %72 : vector<16x16xf32>
    %77 = arith.addf %7, %76 : vector<16x16xf32>
    %78 = arith.select %73, %75, %77 : vector<16x16xi1>, vector<16x16xf32>
    %79 = arith.maximumf %6, %32 : vector<16x16xf32>
    %c1_i32_30 = arith.constant 1 : i32
    %c4_i32_31 = arith.constant 4 : i32
    %80 = arith.muli %c1_i32_30, %c4_i32_31 : i32
    %c0_i32_32 = arith.constant 0 : i32
    %81 = arith.addi %80, %c0_i32_32 : i32
    %82 = arith.index_cast %81 : i32 to index
    %c0_33 = arith.constant 0 : index
    %c0_34 = arith.constant 0 : index
    %83 = vector.load %arg7[%82, %c0_33, %c0_34] : memref<8x8x16xbf16, #tpu.memory_space<vmem>>, vector<1x8x16xbf16>
    %84 = vector.shape_cast %83 : vector<1x8x16xbf16> to vector<8x16xbf16>
    %cst_35 = arith.constant dense<0.000000e+00> : vector<16x16xf32>
    %85 = tpu.matmul %3, %84, %cst_35 {dimension_numbers = #tpu.dot_dimension_numbers<[1], [0], [0], [1], [0, 0, 1, 1], [], []>} : vector<16x8xbf16>, vector<8x16xbf16>, vector<16x16xf32> -> vector<16x16xf32>
    %c1_i32_36 = arith.constant 1 : i32
    %86 = arith.addi %80, %c1_i32_36 : i32
    %87 = arith.index_cast %86 : i32 to index
    %c0_37 = arith.constant 0 : index
    %c0_38 = arith.constant 0 : index
    %88 = vector.load %arg7[%87, %c0_37, %c0_38] : memref<8x8x16xbf16, #tpu.memory_space<vmem>>, vector<1x8x16xbf16>
    %89 = vector.shape_cast %88 : vector<1x8x16xbf16> to vector<8x16xbf16>
    %cst_39 = arith.constant dense<0.000000e+00> : vector<16x16xf32>
    %90 = tpu.matmul %3, %89, %cst_39 {dimension_numbers = #tpu.dot_dimension_numbers<[1], [0], [0], [1], [0, 0, 1, 1], [], []>} : vector<16x8xbf16>, vector<8x16xbf16>, vector<16x16xf32> -> vector<16x16xf32>
    %c2_i32_40 = arith.constant 2 : i32
    %91 = arith.addi %80, %c2_i32_40 : i32
    %92 = arith.index_cast %91 : i32 to index
    %c0_41 = arith.constant 0 : index
    %c0_42 = arith.constant 0 : index
    %93 = vector.load %arg7[%92, %c0_41, %c0_42] : memref<8x8x16xbf16, #tpu.memory_space<vmem>>, vector<1x8x16xbf16>
    %94 = vector.shape_cast %93 : vector<1x8x16xbf16> to vector<8x16xbf16>
    %cst_43 = arith.constant dense<0.000000e+00> : vector<16x16xf32>
    %95 = tpu.matmul %3, %94, %cst_43 {dimension_numbers = #tpu.dot_dimension_numbers<[1], [0], [0], [1], [0, 0, 1, 1], [], []>} : vector<16x8xbf16>, vector<8x16xbf16>, vector<16x16xf32> -> vector<16x16xf32>
    %c3_i32_44 = arith.constant 3 : i32
    %96 = arith.addi %80, %c3_i32_44 : i32
    %97 = arith.index_cast %96 : i32 to index
    %c0_45 = arith.constant 0 : index
    %c0_46 = arith.constant 0 : index
    %98 = vector.load %arg7[%97, %c0_45, %c0_46] : memref<8x8x16xbf16, #tpu.memory_space<vmem>>, vector<1x8x16xbf16>
    %99 = vector.shape_cast %98 : vector<1x8x16xbf16> to vector<8x16xbf16>
    %cst_47 = arith.constant dense<0.000000e+00> : vector<16x16xf32>
    %100 = tpu.matmul %3, %99, %cst_47 {dimension_numbers = #tpu.dot_dimension_numbers<[1], [0], [0], [1], [0, 0, 1, 1], [], []>} : vector<16x8xbf16>, vector<8x16xbf16>, vector<16x16xf32> -> vector<16x16xf32>
    %101 = arith.maximumf %85, %90 : vector<16x16xf32>
    %102 = arith.maximumf %101, %95 : vector<16x16xf32>
    %103 = arith.maximumf %102, %100 : vector<16x16xf32>
    %104 = arith.subf %85, %103 : vector<16x16xf32>
    %105 = math.exp %104 : vector<16x16xf32>
    %106 = arith.subf %90, %103 : vector<16x16xf32>
    %107 = math.exp %106 : vector<16x16xf32>
    %108 = arith.addf %105, %107 : vector<16x16xf32>
    %109 = arith.subf %95, %103 : vector<16x16xf32>
    %110 = math.exp %109 : vector<16x16xf32>
    %111 = arith.addf %108, %110 : vector<16x16xf32>
    %112 = arith.subf %100, %103 : vector<16x16xf32>
    %113 = math.exp %112 : vector<16x16xf32>
    %114 = arith.addf %111, %113 : vector<16x16xf32>
    %c0_i32_48 = arith.constant 0 : i32
    %115 = arith.addi %80, %c0_i32_48 : i32
    %116 = vector.broadcast %115 : i32 to vector<16x16xi32>
    %117 = arith.cmpi eq, %5, %116 : vector<16x16xi32>
    %cst_49 = arith.constant 0.000000e+00 : f32
    %118 = vector.broadcast %cst_49 : f32 to vector<16x16xf32>
    %119 = arith.select %117, %85, %118 : vector<16x16xi1>, vector<16x16xf32>
    %120 = arith.addf %67, %119 : vector<16x16xf32>
    %c1_i32_50 = arith.constant 1 : i32
    %121 = arith.addi %80, %c1_i32_50 : i32
    %122 = vector.broadcast %121 : i32 to vector<16x16xi32>
    %123 = arith.cmpi eq, %5, %122 : vector<16x16xi32>
    %cst_51 = arith.constant 0.000000e+00 : f32
    %124 = vector.broadcast %cst_51 : f32 to vector<16x16xf32>
    %125 = arith.select %123, %90, %124 : vector<16x16xi1>, vector<16x16xf32>
    %126 = arith.addf %120, %125 : vector<16x16xf32>
    %c2_i32_52 = arith.constant 2 : i32
    %127 = arith.addi %80, %c2_i32_52 : i32
    %128 = vector.broadcast %127 : i32 to vector<16x16xi32>
    %129 = arith.cmpi eq, %5, %128 : vector<16x16xi32>
    %cst_53 = arith.constant 0.000000e+00 : f32
    %130 = vector.broadcast %cst_53 : f32 to vector<16x16xf32>
    %131 = arith.select %129, %95, %130 : vector<16x16xi1>, vector<16x16xf32>
    %132 = arith.addf %126, %131 : vector<16x16xf32>
    %c3_i32_54 = arith.constant 3 : i32
    %133 = arith.addi %80, %c3_i32_54 : i32
    %134 = vector.broadcast %133 : i32 to vector<16x16xi32>
    %135 = arith.cmpi eq, %5, %134 : vector<16x16xi32>
    %cst_55 = arith.constant 0.000000e+00 : f32
    %136 = vector.broadcast %cst_55 : f32 to vector<16x16xf32>
    %137 = arith.select %135, %100, %136 : vector<16x16xi1>, vector<16x16xf32>
    %138 = arith.addf %132, %137 : vector<16x16xf32>
    %139 = arith.subf %103, %79 : vector<16x16xf32>
    %140 = math.absf %139 : vector<16x16xf32>
    %cst_56 = arith.constant 0.000000e+00 : f32
    %141 = vector.broadcast %cst_56 : f32 to vector<16x16xf32>
    %142 = arith.subf %141, %140 : vector<16x16xf32>
    %143 = math.exp %142 : vector<16x16xf32>
    %144 = arith.cmpf ogt, %103, %79 : vector<16x16xf32>
    %145 = arith.mulf %78, %143 : vector<16x16xf32>
    %146 = arith.addf %145, %114 : vector<16x16xf32>
    %147 = arith.mulf %114, %143 : vector<16x16xf32>
    %148 = arith.addf %78, %147 : vector<16x16xf32>
    %149 = arith.select %144, %146, %148 : vector<16x16xi1>, vector<16x16xf32>
    %150 = arith.maximumf %79, %103 : vector<16x16xf32>
    %c2_i32_57 = arith.constant 2 : i32
    %151 = math.log %149 : vector<16x16xf32>
    %152 = arith.addf %150, %151 : vector<16x16xf32>
    %c255_i32 = arith.constant 255 : i32
    %153 = vector.broadcast %c255_i32 : i32 to vector<16x16xi32>
    %154 = arith.cmpi ne, %5, %153 : vector<16x16xi32>
    %155 = arith.subf %152, %138 : vector<16x16xf32>
    %cst_58 = arith.constant 0.000000e+00 : f32
    %156 = vector.broadcast %cst_58 : f32 to vector<16x16xf32>
    %157 = arith.select %154, %155, %156 : vector<16x16xi1>, vector<16x16xf32>
    %158 = vector.shape_cast %157 : vector<16x16xf32> to vector<1x16x16xf32>
    %cst_59 = arith.constant dense<0.000000e+00> : vector<1xf32>
    %159 = vector.multi_reduction <add>, %158, %cst_59 [1, 2] : vector<1x16x16xf32> to vector<1xf32>
    %160 = vector.shape_cast %159 : vector<1xf32> to vector<1x1x1xf32>
    %161 = vector.extract %160[0, 0, 0] : f32 from vector<1x1x1xf32>
    %162 = arith.extui %154 : vector<16x16xi1> to vector<16x16xi32>
    %163 = arith.sitofp %162 : vector<16x16xi32> to vector<16x16xf32>
    %164 = vector.shape_cast %163 : vector<16x16xf32> to vector<1x16x16xf32>
    %cst_60 = arith.constant dense<0.000000e+00> : vector<1xf32>
    %165 = vector.multi_reduction <add>, %164, %cst_60 [1, 2] : vector<1x16x16xf32> to vector<1xf32>
    %166 = vector.shape_cast %165 : vector<1xf32> to vector<1x1x1xf32>
    %167 = vector.extract %166[0, 0, 0] : f32 from vector<1x1x1xf32>
    %168 = tpu.iota {dimensions = array<i32: 0>} : vector<8x128xi32>
    %169 = tpu.iota {dimensions = array<i32: 1>} : vector<8x128xi32>
    %c0_i32_61 = arith.constant 0 : i32
    %170 = vector.broadcast %c0_i32_61 : i32 to vector<8x128xi32>
    %171 = arith.cmpi eq, %168, %170 : vector<8x128xi32>
    %c0_i32_62 = arith.constant 0 : i32
    %172 = vector.broadcast %c0_i32_62 : i32 to vector<8x128xi32>
    %173 = arith.cmpi eq, %169, %172 : vector<8x128xi32>
    %174 = arith.andi %171, %173 : vector<8x128xi1>
    %c0_i32_63 = arith.constant 0 : i32
    %175 = vector.broadcast %c0_i32_63 : i32 to vector<8x128xi32>
    %176 = arith.cmpi eq, %168, %175 : vector<8x128xi32>
    %c1_i32_64 = arith.constant 1 : i32
    %177 = vector.broadcast %c1_i32_64 : i32 to vector<8x128xi32>
    %178 = arith.cmpi eq, %169, %177 : vector<8x128xi32>
    %179 = arith.andi %176, %178 : vector<8x128xi1>
    %cst_65 = arith.constant 0.000000e+00 : f32
    %180 = vector.broadcast %167 : f32 to vector<8x128xf32>
    %181 = vector.broadcast %cst_65 : f32 to vector<8x128xf32>
    %182 = arith.select %179, %180, %181 : vector<8x128xi1>, vector<8x128xf32>
    %183 = vector.broadcast %161 : f32 to vector<8x128xf32>
    %184 = arith.select %174, %183, %182 : vector<8x128xi1>, vector<8x128xf32>
    %c0_66 = arith.constant 0 : index
    %c0_67 = arith.constant 0 : index
    %c0_68 = arith.constant 0 : index
    %c0_69 = arith.constant 0 : index
    %185 = vector.load %arg6[%c0_66, %c0_67, %c0_68, %c0_69] : memref<1x1x8x128xf32, #tpu.memory_space<vmem>>, vector<1x1x8x128xf32>
    %186 = vector.shape_cast %185 : vector<1x1x8x128xf32> to vector<8x128xf32>
    %187 = vector.shape_cast %184 : vector<8x128xf32> to vector<1x1x8x128xf32>
    tpu.vector_store %arg6[%c0_66, %c0_67, %c0_68, %c0_69], %187 {strides = array<i32>} : memref<1x1x8x128xf32, #tpu.memory_space<vmem>>, vector<1x1x8x128xf32>,
    return
  }
  func.func @transform_0(%arg0: i32, %arg1: i32) -> (i32, i32, i32) {
    %c0_i32 = arith.constant 0 : i32
    %c0_i32_0 = arith.constant 0 : i32
    %c0_i32_1 = arith.constant 0 : i32
    return %arg0, %c0_i32, %c0_i32_0 : i32, i32, i32
  }
  func.func @transform_1(%arg0: i32, %arg1: i32) -> (i32, i32) {
    %c0_i32 = arith.constant 0 : i32
    %c0_i32_0 = arith.constant 0 : i32
    return %arg1, %c0_i32 : i32, i32
  }
  func.func @transform_2(%arg0: i32, %arg1: i32) -> (i32, i32) {
    %c0_i32 = arith.constant 0 : i32
    %c0_i32_0 = arith.constant 0 : i32
    %c0_i32_1 = arith.constant 0 : i32
    return %c0_i32, %c0_i32_0 : i32, i32
  }
  func.func @transform_3(%arg0: i32, %arg1: i32) -> (i32, i32, i32) {
    %c0_i32 = arith.constant 0 : i32
    %c0_i32_0 = arith.constant 0 : i32
    return %arg0, %arg1, %c0_i32 : i32, i32, i32
  }
  func.func @transform_4(%arg0: i32, %arg1: i32) -> (i32, i32, i32, i32) {
    %c0_i32 = arith.constant 0 : i32
    %c0_i32_0 = arith.constant 0 : i32
    %c0_i32_1 = arith.constant 0 : i32
    return %arg0, %arg1, %c0_i32, %c0_i32_0 : i32, i32, i32, i32
  }
}

</mosaic_0001>

<bundles_post_ra>
// kernel: tpu_custom_call.1
= control target key start
LH: loop header
LB: loop body
LE: loop exit
PB: predicated region body
PF: predicated region fallthrough
CT: control target
= control target key end

     0   :  { %9 = vsyncpa [#allocation4], 0  ;;  %s1795_s0 = inlined_call_operand.vmem [shape: bf16[2,64,8], index: 0, kind: input, shape index: {}]   ;;  %s1796_s1 = inlined_call_operand.vmem [shape: bf16[16,8], index: 1, kind: input, shape index: {}]   ;;  %s1797_s2 = inlined_call_operand.vmem [shape: bf16[8,16], index: 2, kind: input, shape index: {}]   ;;  %s1798_s3 = inlined_call_operand.vmem [shape: s32[2,16,16], index: 3, kind: input, shape index: {}]   ;;  %s1799_s4 = inlined_call_operand.hbm [shape: f32[2,1,8,128], index: 4, kind: output, shape index: {}]  }
   0x1   :  { %11 = vsyncpa [#allocation4 + $0x1], 0  ;;  %s1495_s15 = smov 0   ;;  %s1497_s16 = smov 0  }
   0x2   :  { %s1499_s17 = smov 0   ;;  %s1501_s18 = smov 0  }
   0x3   :  { %s1503_s19 = smov 0   ;;  %s1505_s20 = smov 0  }
   0x4 LB: > { %s1143_s21 = sadd.s32 4294967295, %s1465_s20   ;;  %s1144_s22 = sadd.s32 4294967294, %s1465_s20   ;;  %s1465_s20 = sphi %s1505_s20, %s17_s20   ;;  %s1461_s19 = sphi %s1503_s19, %s1806_s19   ;;  %s1457_s18 = sphi %s1501_s18, %s1805_s18   ;;  %s1453_s17 = sphi %s1499_s17, %s1804_s17   ;;  %s1449_s16 = sphi %s1497_s16, %s1803_s16   ;;  %s1445_s15 = sphi %s1495_s15, %s1802_s15  }
   0x5   : > { %s29_s23 = sadd.s32 1, %s1461_s19  ;;  %s139_s24 = sadd.s32 1, %s1453_s17 }
   0x6   : > { %p31_p0 = scmp.ge.s32.totalorder %s29_s23, 2  ;;  %p149_p1 = scmp.ne.s32.totalorder %s1453_s17, %s1449_s16 }
   0x7   : > { %p150_p2 = scmp.eq.s32.totalorder %s1143_s21, 1  ;;  %p155_p3 = scmp.ne.s32.totalorder %s1449_s16, %s1445_s15 }
   0x8   : > { %s1808_s23 = smov (%p31_p0, %s29_s23), 0  ;;  %p156_p5 = scmp.eq.s32.totalorder %s1144_s22, 1 }
   0x9   : > { %p1535_p4 = por %p150_p2, %p149_p1  ;;  %s134_s26 = ssub.s32 %s1461_s19, %s1808_s23 }
   0xa   : > { %p1148_p6 = scmp.ge.s32.totalorder %s1465_s20, 1  ;;  %p137_p7 = scmp.eq.s32.totalorder %s134_s26, 0 }
   0xb   : > { %p1542_p8 = por %p156_p5, %p155_p3  ;;  %p207_p9 = scmp.lt.s32.totalorder %s1465_s20, 3 }
   0xc   : > { %s1548_s28 = scalar_select %p137_p7, %s1453_s17, %s139_s24  }
   0xd   : > { %p208_p10 = pnand %p1148_p6, %p207_p9 }
   0xe   : > { %v281_v0 = vld [vmem:[%s1797_s2] sm:$0xf] (!%p208_p10)  ;;  %vm315_vm0 = vcmask (!%p208_p10), 1043456   ;;  %p247_p11 = scmp.lt.s32.totalorder (!%p208_p10), %s1457_s18, 1  ;;  %vm302_vm1 = vcmask (!%p208_p10), 64512   ;;  %v1467_v6 = vmov (!%p208_p10), 0.0  }
   0xf   : > { %211 = sbr.rel (%p208_p10) target bundleno = 779 (0x30b), region = 36  ;;  %1276 = vmatprep.subr.msk.bf16.mxu0 (!%p208_p10), %vm315_vm0, %v281_v0  ;;  %v317_v1 = vsel (!%p208_p10), %vm315_vm0, %v281_v0, 0  ;;  %1228 = vmatprep.subr.bf16.mxu1 (!%p208_p10), %v1467_v6  ;;  %vm1468_vm2 = vmmov (!%p208_p10), 0   ;;  %vm416_vm3 = vcmask (!%p208_p10), 125952   ;;  %v1342_v26 = vld [vmem:[%s1796_s1] sm:$0xff] (!%p208_p10)   ;;  %s244_s22 = sand.u32 (!%p208_p10), 1, %s1449_s16  }
  0x10   : > { %1219 = vmatpush3.bf16.msra.mxu0 (!%p208_p10), %v317_v1  ;;  %1230 = vmatprep.mubr.msk.bf16.mxu1 (!%p208_p10), %vm1468_vm2, %v1467_v6  ;;  %s1149_s24 = sshll.u32 (!%p208_p10), %s244_s22, 3  ;;  %s1184_s26 = sshll.u32 (!%p208_p10), %s1457_s18, 7 }
  0x11   : > { %1240 = vmatprep.subr.bf16.mxu0 (!%p208_p10), %v1467_v6  ;;  %s246_s30 = scalar_lea.vmem (!%p208_p10), [#allocation3], %s1149_s24  ;;  %s1469_s11 = smov (!%p208_p10), [#allocation3]  }
  0x16   : > { %s1557_s5 = scalar_select %p247_p11, %s1457_s18, 1 }
  0x17   : > { %s1028_s18 = scalar_lea.sflag [#allocation4], %s244_s22 }
  0x18   : > { %s1187_s6 = sshll.u32 %s1557_s5, 5  ;;  %s1188_s12 = sshll.u32 %s1557_s5, 4 }
  0x19   : > { %s251_s9 = scalar_lea.vmem %s1795_s0, %s1187_s6  ;;  %s266_s21 = scalar_lea.vmem %s1798_s3, %s1188_s12 }
  0x1a   : > { %v1338_v2 = vld [vmem:[%s251_s9] sm:$0xff]   ;;  %v1339_v3 = vld [vmem:[%s251_s9 + $0x8] sm:$0xff]   ;;  %v1340_v4 = vld [vmem:[%s251_s9 + $0x10] sm:$0xff]   ;;  %s1042_s5 = sshll.u32 %s246_s30, 4  ;;  %s1391_s12 = sshll.u32 %s1469_s11, 4  ;;  %s1750_s5 = int_to_ptr.vmem [resolvable:$true] %s1042_s5  ;;  %s1392_s12 = int_to_ptr.vmem [resolvable:$false] %s1391_s12 }
  0x1b   : > { %1220 = vmatprep.mubr.msk.bf16.mxu0 %vm302_vm1, %v1338_v2  ;;  %v1341_v5 = vld [vmem:[%s251_s9 + $0x18] sm:$0xff]   ;;  %v1622_v40 = vld [vmem:[%s266_s21] sm:$0xff]  ;;  %v1624_v41 = vld [vmem:[%s266_s21 + $0x8] sm:$0xff]  ;;  %s1748_s9 = scalar_lea.hbm %s1799_s4, %s1184_s26  ;;  %s1387_s10 = scalar_lea.vmem %s1750_s5, 128 }
  0x1c   : > { %1221 = vmatmul.mubr.msk.bf16.vlgmr.msra.gmra.mrb[0].mxu0 %vm302_vm1, %v1339_v3  ;;  %vm670_vm4 = vcmp.eq.s32.totalorder %v1622_v40, 2  ;;  %vm658_vm5 = vcmp.eq.s32.totalorder %v1622_v40, 0  ;;  %vm671_vm6 = vcmp.eq.s32.totalorder %v1624_v41, 2  ;;  %vm659_vm7 = vcmp.eq.s32.totalorder %v1624_v41, 0  ;;  %p1388_p12 = scmp.ne.s32.totalorder %s1750_s5, %s1387_s10  ;;  %s1393_s13 = scalar_lea.vmem %s1392_s12, 256 }
  0x1d   : > { %1224 = vmatprep.mubr.msk.bf16.mxu0 %vm302_vm1, %v1340_v4  ;;  %vm664_vm8 = vcmp.eq.s32.totalorder %v1622_v40, 1  ;;  %vm924_vm9 = vcmp.eq.s32.totalorder %v1622_v40, 4  ;;  %vm665_vm10 = vcmp.eq.s32.totalorder %v1624_v41, 1  ;;  %vm925_vm11 = vcmp.eq.s32.totalorder %v1624_v41, 4  ;;  %p1394_p1 = scmp.lt.s32.totalorder %s1750_s5, %s1392_s12  ;;  %p1395_p2 = scmp.lt.s32.totalorder %s1393_s13, %s1387_s10 }
  0x1e   : > { %vm676_vm12 = vcmp.eq.s32.totalorder %v1622_v40, 3  ;;  %vm936_vm13 = vcmp.eq.s32.totalorder %v1622_v40, 6  ;;  %vm677_vm14 = vcmp.eq.s32.totalorder %v1624_v41, 3  ;;  %vm930_vm15 = vcmp.eq.s32.totalorder %v1622_v40, 5  ;;  %p1389_p13 = pnand %p1388_p12, %p1535_p4 }
  0x1f   : > { %p1396_p3 = por %p1395_p2, %p1394_p1 }
  0x20   : > { %p1390_p0 = pneg %p1389_p13 }
  0x22   : > { %p1397_p5 = pnand %p1396_p3, %p1390_p0 }
  0x24   : > { %1225 = vmatmul.mubr.msk.bf16.gmra.mrb[4].mxu0 %vm302_vm1, %v1341_v5 }
  0x25   : > { %1242 = vmatprep.mubr.msk.bf16.mxu0 %vm1468_vm2, %v1467_v6 }
  0xef   : > { %v1222_v7 = vpop.f32.mrb[0].mxu0 }
  0xf0   : > { %v1191_v8 = vpack.c.bf16 %v1222_v7, %v1222_v7  ;;  %v353_v9 = vpop.f32.mrb[1].mxu0 }
  0xf1   : > { %v1189_v10 = vpack.c.bf16 %v353_v9, %v353_v9  ;;  %v1223_v11 = vpop.f32.mrb[2].mxu0 }
  0xf2   : > { %419 = vst.msk [vmem:[#allocation2 + $0x8] sm:$0xf] %vm416_vm3, %v1191_v8  ;;  %v1192_v12 = vpack.c.bf16 %v1223_v11, %v1223_v11  ;;  %v356_v13 = vpop.f32.mrb[3].mxu0 }
  0xf3   : > { %417 = vst.msk [vmem:[#allocation2] sm:$0xf] %vm416_vm3, %v1189_v10  ;;  %v1190_v14 = vpack.c.bf16 %v356_v13, %v356_v13 }
  0xf4   : > { %420 = vst.msk [vmem:[#allocation2 + $0xc] sm:$0xf] %vm416_vm3, %v1192_v12 }
  0xf5   : > { %418 = vst.msk [vmem:[#allocation2 + $0x4] sm:$0xf] %vm416_vm3, %v1190_v14 }
  0xf7   : > { %v1226_v15 = vpop.f32.mrb[4].mxu0 }
  0xf8   : > { %v1195_v16 = vpack.c.bf16 %v1226_v15, %v1226_v15  ;;  %v369_v17 = vpop.f32.mrb[5].mxu0 }
  0xf9   : > { %v531_v18 = vld [vmem:[#allocation2 + $0x8] sm:$0xf]  ;;  %v1193_v19 = vpack.c.bf16 %v369_v17, %v369_v17  ;;  %v1227_v20 = vpop.f32.mrb[6].mxu0 }
  0xfa   : > { %v533_v21 = vsel %vm315_vm0, %v531_v18, 0  ;;  %423 = vst.msk [vmem:[#allocation2 + $0x18] sm:$0xf] %vm416_vm3, %v1195_v16  ;;  %v429_v22 = vld [vmem:[#allocation2] sm:$0xf]  ;;  %v1196_v23 = vpack.c.bf16 %v1227_v20, %v1227_v20  ;;  %v372_v24 = vpop.f32.mrb[7].mxu0 }
  0xfb   : > { %1241 = vmatpush3.bf16.msra.mxu0 %v533_v21  ;;  %v441_v25 = vsel %vm315_vm0, %v429_v22, 0  ;;  %421 = vst.msk [vmem:[#allocation2 + $0x10] sm:$0xf] %vm416_vm3, %v1193_v19  ;;  %v1194_v27 = vpack.c.bf16 %v372_v24, %v372_v24  ;;  %v577_v33 = vld [vmem:[#allocation2 + $0xc] sm:$0xf] }
  0xfc   : > { %1229 = vmatpush3.bf16.msra.mxu1 %v441_v25  ;;  %424 = vst.msk [vmem:[#allocation2 + $0x1c] sm:$0xf] %vm416_vm3, %v1196_v23  ;;  %v485_v28 = vld [vmem:[#allocation2 + $0x4] sm:$0xf]  ;;  %1252 = vmatprep.subr.bf16.mxu0 %v1467_v6  ;;  %v579_v35 = vsel %vm315_vm0, %v577_v33, 0 }
  0xfd   : > { %1234 = vmatprep.subr.bf16.mxu1 %v1467_v6  ;;  %422 = vst.msk [vmem:[#allocation2 + $0x14] sm:$0xf] %vm416_vm3, %v1194_v27  ;;  %v487_v29 = vsel %vm315_vm0, %v485_v28, 0  ;;  %vm943_vm3 = vcmp.eq.s32.totalorder %v1624_v41, 7 }
  0xfe   : > { %1243 = vmatmul.mubr.msk.bf16.vlgmr.msra.gmra.mrb[8].mxu0 %vm302_vm1, %v1342_v26 }
  0xff   : > { %1231 = vmatmul.mubr.msk.bf16.vlgmr.msra.gmra.mrb[0].mxu1 %vm302_vm1, %v1342_v26  ;;  %1254 = vmatprep.mubr.msk.bf16.mxu0 %vm1468_vm2, %v1467_v6 }
 0x100   : > { %1235 = vmatpush3.bf16.msra.mxu1 %v487_v29  ;;  %1236 = vmatprep.mubr.msk.bf16.mxu1 %vm1468_vm2, %v1467_v6 }
 0x101   : > { %1246 = vmatprep.subr.bf16.mxu1 %v1467_v6  ;;  %v797_v31 = vld [vmem:[#allocation2 + $0x18] sm:$0xf] }
 0x102   : > { %v705_v30 = vld [vmem:[#allocation2 + $0x10] sm:$0xf]  ;;  %v799_v34 = vsel %vm315_vm0, %v797_v31, 0 }
 0x103   : > { %v707_v32 = vsel %vm315_vm0, %v705_v30, 0  ;;  %v843_v38 = vld [vmem:[#allocation2 + $0x1c] sm:$0xf] }
 0x104   : > { %1253 = vmatpush3.bf16.msra.mxu0 %v707_v32  ;;  %v751_v36 = vld [vmem:[#allocation2 + $0x14] sm:$0xf]  ;;  %v845_v39 = vsel %vm315_vm0, %v843_v38, 0 }
 0x105   : > { %1264 = vmatprep.subr.bf16.mxu0 %v1467_v6  ;;  %v753_v37 = vsel %vm315_vm0, %v751_v36, 0  ;;  %vm931_vm0 = vcmp.eq.s32.totalorder %v1624_v41, 5 }
 0x107   : > { %1237 = vmatmul.mubr.msk.bf16.vlgmr.msra.gmra.mrb[4].mxu1 %vm302_vm1, %v1342_v26  ;;  %1255 = vmatmul.mubr.msk.bf16.vlgmr.msra.gmra.mrb[12].mxu0 %vm302_vm1, %v1342_v26 }
 0x108   : > { %1247 = vmatpush3.bf16.msra.mxu1 %v579_v35  ;;  %1265 = vmatpush3.bf16.msra.mxu0 %v799_v34 }
 0x109   : > { %1248 = vmatprep.mubr.msk.bf16.mxu1 %vm1468_vm2, %v1467_v6  ;;  %1258 = vmatprep.subr.bf16.mxu1 %v1467_v6 }
 0x10a   : > { %1266 = vmatprep.mubr.msk.bf16.mxu0 %vm1468_vm2, %v1467_v6 }
 0x10f   : > { %1249 = vmatmul.mubr.msk.bf16.vlgmr.msra.gmra.mrb[8].mxu1 %vm302_vm1, %v1342_v26  ;;  %1267 = vmatmul.mubr.msk.bf16.vlgmr.msra.gmra.mrb[16].mxu0 %vm302_vm1, %v1342_v26 }
 0x110   : > { %1259 = vmatpush3.bf16.msra.mxu1 %v753_v37  ;;  %1260 = vmatprep.mubr.msk.bf16.mxu1 %vm1468_vm2, %v1467_v6 }
 0x111   : > { %1270 = vmatprep.subr.bf16.mxu1 %v1467_v6 }
 0x117   : > { %1261 = vmatmul.mubr.msk.bf16.vlgmr.msra.gmra.mrb[12].mxu1 %vm302_vm1, %v1342_v26 }
 0x118   : > { %1271 = vmatpush3.bf16.msra.mxu1 %v845_v39  ;;  %1272 = vmatprep.mubr.msk.bf16.mxu1 %vm1468_vm2, %v1467_v6  ;;  %vm942_vm2 = vcmp.eq.s32.totalorder %v1622_v40, 7 }
 0x11f   : > { %1273 = vmatmul.mubr.msk.bf16.vlgmr.msra.gmra.mrb[16].mxu1 %vm302_vm1, %v1342_v26  ;;  %vm937_vm1 = vcmp.eq.s32.totalorder %v1624_v41, 6 }
 0x1d1   : > { %v1628_v42 = vpop.f32.mrb[8].mxu0 }
 0x1d2   : > { %v477_v43 = vpop.f32.mrb[0].mxu1  ;;  %v672_v44 = vsel %vm670_vm4, %v1628_v42, 0.0  ;;  %v1244_v45 = vpop.f32.mrb[9].mxu0 }
 0x1d3   : > { %v660_v46 = vsel %vm658_vm5, %v477_v43, 0.0  ;;  %v1232_v47 = vpop.f32.mrb[1].mxu1  ;;  %v1633_v48 = vpop.f32.mrb[10].mxu0 }
 0x1d4   : > { %v1635_v49 = vpop.f32.mrb[2].mxu1  ;;  %v673_v50 = vsel %vm671_vm6, %v1633_v48, 0.0  ;;  %v1245_v51 = vpop.f32.mrb[11].mxu0 }
 0x1d5   : > { %v661_v52 = vsel %vm659_vm7, %v1635_v49, 0.0  ;;  %v1233_v53 = vpop.f32.mrb[3].mxu1 }
 0x1da   : > { %v523_v54 = vpop.f32.mrb[4].mxu1  ;;  %v1642_v55 = vpop.f32.mrb[12].mxu0 }
 0x1db   : > { %v622_v56 = vmax.f32 %v477_v43, %v523_v54  ;;  %v666_v57 = vsel %vm664_vm8, %v523_v54, 0.0  ;;  %v1238_v58 = vpop.f32.mrb[5].mxu1  ;;  %v926_v59 = vsel %vm924_vm9, %v1642_v55, 0.0  ;;  %v1256_v60 = vpop.f32.mrb[13].mxu0  ;;  %vm978_vm8 = vcmp.ne.s32.totalorder %v1622_v40, 255 }
 0x1dc   : > { %v668_v61 = vadd.f32 %v666_v57, %v660_v46  ;;  %v526_v62 = vpop.f32.mrb[6].mxu1  ;;  %v1646_v63 = vpop.f32.mrb[14].mxu0  ;;  %vm979_vm9 = vcmp.ne.s32.totalorder %v1624_v41, 255 }
 0x1dd   : > { %v623_v0 = vmax.f32 %v1635_v49, %v526_v62  ;;  %v667_v1 = vsel %vm665_vm10, %v526_v62, 0.0  ;;  %v624_v2 = vmax.f32 %v622_v56, %v1628_v42  ;;  %v1239_v3 = vpop.f32.mrb[7].mxu1  ;;  %v927_v4 = vsel %vm925_vm11, %v1646_v63, 0.0  ;;  %v1257_v5 = vpop.f32.mrb[15].mxu0 }
 0x1de   : > { %v669_v7 = vadd.f32 %v667_v1, %v661_v52  ;;  %v674_v8 = vadd.f32 %v672_v44, %v668_v61  ;;  %vm984_vm10 = vcmask 130048  }
 0x1df   : > { %v625_v9 = vmax.f32 %v623_v0, %v1633_v48 }
 0x1e0   : > { %v675_v10 = vadd.f32 %v673_v50, %v669_v7 }
 0x1e2   : > { %v615_v11 = vpop.f32.mrb[8].mxu1  ;;  %v1654_v12 = vpop.f32.mrb[16].mxu0 }
 0x1e3   : > { %v1656_v13 = vmax.f32 %v624_v2, %v615_v11  ;;  %v678_v14 = vsel %vm676_vm12, %v615_v11, 0.0  ;;  %v1250_v15 = vpop.f32.mrb[9].mxu1  ;;  %v938_v16 = vsel %vm936_vm13, %v1654_v12, 0.0  ;;  %v1268_v17 = vpop.f32.mrb[17].mxu0 }
 0x1e4   : > { %v680_v18 = vadd.f32 %v678_v14, %v674_v8  ;;  %v618_v19 = vpop.f32.mrb[10].mxu1  ;;  %v1662_v20 = vpop.f32.mrb[18].mxu0 }
 0x1e5   : > { %v628_v21 = vsub.f32 %v477_v43, %v1656_v13  ;;  %v634_v22 = vsub.f32 %v523_v54, %v1656_v13  ;;  %v642_v23 = vsub.f32 %v1628_v42, %v1656_v13  ;;  %v650_v24 = vsub.f32 %v615_v11, %v1656_v13  ;;  %v1251_v25 = vpop.f32.mrb[11].mxu1  ;;  %v1269_v26 = vpop.f32.mrb[19].mxu0 }
 0x1e6   : > { %v1175_v27 = vadd.f32 inf, %v1656_v13  ;;  %v1671_v28 = vmax.f32 %v625_v9, %v618_v19  ;;  %v679_v29 = vsel %vm677_vm14, %v618_v19, 0.0  ;;  %v928_v30 = vadd.f32 %v926_v59, %v680_v18 }
 0x1e7   : > { %v630_v31 = vmul.f32 1.442695, %v628_v21  ;;  %v636_v32 = vmul.f32 1.442695, %v634_v22  ;;  %v644_v33 = vmul.f32 1.442695, %v642_v23  ;;  %v681_v34 = vadd.f32 %v679_v29, %v675_v10 }
 0x1e8   : > { %v652_v35 = vmul.f32 1.442695, %v650_v24  ;;  %v684_v36 = vand.u32 2147483647, %v1175_v27  ;;  %v629_v37 = vsub.f32 %v1635_v49, %v1671_v28  ;;  %v635_v38 = vsub.f32 %v526_v62, %v1671_v28 }
 0x1e9   : > { %1343 = vpow2.f32 %v630_v31  ;;  %v643_v39 = vsub.f32 %v1633_v48, %v1671_v28  ;;  %v651_v42 = vsub.f32 %v618_v19, %v1671_v28  ;;  %v1176_v43 = vadd.f32 inf, %v1671_v28 }
 0x1ea   : > { %1345 = vpow2.f32 %v636_v32  ;;  %v686_v44 = vsub.f32 0.0, %v684_v36  ;;  %v632_v45 = vmul.f32 1.442695, %v629_v37  ;;  %v638_v46 = vmul.f32 1.442695, %v635_v38  ;;  %v789_v47 = vpop.f32.mrb[12].mxu1 }
 0x1eb   : > { %1347 = vpow2.f32 %v644_v33  ;;  %v646_v50 = vmul.f32 1.442695, %v643_v39  ;;  %v654_v51 = vmul.f32 1.442695, %v651_v42  ;;  %v685_v52 = vand.u32 2147483647, %v1176_v43 }
 0x1ec   : > { %1349 = vpow2.f32 %v652_v35  ;;  %v688_v49 = vmul.f32 1.442695, %v686_v44  ;;  %v929_v53 = vadd.f32 %v927_v4, %v681_v34  ;;  %v888_v54 = vmax.f32 %v1642_v55, %v789_v47  ;;  %v1262_v56 = vpop.f32.mrb[13].mxu1 }
 0x1ed   : > { %1351 = vpow2.f32 %v632_v45  ;;  %v687_v48 = vsub.f32 0.0, %v685_v52  ;;  %v932_v57 = vsel %vm930_vm15, %v789_v47, 0.0  ;;  %v792_v58 = vpop.f32.mrb[14].mxu1  ;;  %v939_v59 = vsel %vm937_vm1, %v1662_v20, 0.0 }
 0x1ee   : > { %1353 = vpow2.f32 %v688_v49  ;;  %v934_v60 = vadd.f32 %v932_v57, %v928_v30  ;;  %v889_v61 = vmax.f32 %v1646_v63, %v792_v58  ;;  %v933_v62 = vsel %vm931_vm0, %v792_v58, 0.0  ;;  %v1263_v0 = vpop.f32.mrb[15].mxu1 }
 0x1ef   : > { %1355 = vpow2.f32 %v638_v46  ;;  %v690_v1 = vmul.f32 1.442695, %v687_v48  ;;  %v935_v2 = vadd.f32 %v933_v62, %v929_v53  ;;  %v890_v3 = vmax.f32 %v888_v54, %v1654_v12 }
 0x1f0   : > { %v940_v4 = vadd.f32 %v938_v16, %v934_v60  ;;  %v891_v5 = vmax.f32 %v889_v61, %v1662_v20  ;;  %1357 = vpow2.f32 %v646_v50  ;;  %vm692_vm4 = vcmp.gt.f32.partialorder %v1656_v13, -inf }
 0x1f1   : > { %v941_v7 = vadd.f32 %v939_v59, %v935_v2  ;;  %1359 = vpow2.f32 %v690_v1  ;;  %vm693_vm5 = vcmp.gt.f32.partialorder %v1671_v28, -inf }
 0x1f2   : > { %v881_v8 = vpop.f32.mrb[16].mxu1  ;;  %1361 = vpow2.f32 %v654_v51 }
 0x1f3   : > { %v1344_v9 = vpop.eup %1343  ;;  %v1694_v10 = vmax.f32 %v890_v3, %v881_v8  ;;  %v944_v11 = vsel %vm942_vm2, %v881_v8, 0.0  ;;  %v1274_v14 = vpop.f32.mrb[17].mxu1 }
 0x1f4   : > { %v1346_v15 = vpop.eup %1345  ;;  %v1697_v17 = vadd.f32 %v944_v11, %v940_v4  ;;  %v884_v16 = vpop.f32.mrb[18].mxu1 }
 0x1f5   : > { %v1348_v18 = vpop.eup %1347  ;;  %v640_v19 = vadd.f32 %v1346_v15, %v1344_v9  ;;  %v894_v21 = vsub.f32 %v1642_v55, %v1694_v10  ;;  %v900_v22 = vsub.f32 %v789_v47, %v1694_v10  ;;  %v908_v23 = vsub.f32 %v1654_v12, %v1694_v10  ;;  %v1275_v24 = vpop.f32.mrb[19].mxu1 }
 0x1f6   : > { %v1350_v25 = vpop.eup %1349  ;;  %v916_v26 = vsub.f32 %v881_v8, %v1694_v10  ;;  %v948_v27 = vsub.f32 %v1694_v10, %v1656_v13  ;;  %v1708_v29 = vmax.f32 %v891_v5, %v884_v16  ;;  %v945_v30 = vsel %vm943_vm3, %v884_v16, 0.0 }
 0x1f7   : > { %v1352_v31 = vpop.eup %1351  ;;  %v648_v32 = vadd.f32 %v1348_v18, %v640_v19  ;;  %v896_v55 = vmul.f32 1.442695, %v894_v21  ;;  %v902_v33 = vmul.f32 1.442695, %v900_v22  ;;  %v910_v34 = vmul.f32 1.442695, %v908_v23 }
 0x1f8   : > { %v1354_v35 = vpop.eup %1353  ;;  %v918_v36 = vmul.f32 1.442695, %v916_v26  ;;  %v950_v12 = vand.u32 2147483647, %v948_v27  ;;  %v895_v37 = vsub.f32 %v1646_v63, %v1708_v29  ;;  %v901_v38 = vsub.f32 %v792_v58, %v1708_v29 }
 0x1f9   : > { %v1356_v39 = vpop.eup %1355  ;;  %v656_v42 = vadd.f32 %v1350_v25, %v648_v32  ;;  %v694_v43 = vmul.f32 0.0, %v1354_v35  ;;  %1363 = vpow2.f32 %v896_v55  ;;  %v909_v44 = vsub.f32 %v1662_v20, %v1708_v29 }
 0x1fa   : > { %v641_v45 = vadd.f32 %v1356_v39, %v1352_v31  ;;  %1365 = vpow2.f32 %v902_v33  ;;  %v952_v46 = vsub.f32 0.0, %v950_v12  ;;  %v898_v47 = vmul.f32 1.442695, %v895_v37  ;;  %v1358_v50 = vpop.eup %1357 }
 0x1fb   : > { %v696_v51 = vadd.f32 %v694_v43, %v656_v42  ;;  %v698_v52 = vmul.f32 %v1354_v35, %v656_v42  ;;  %1367 = vpow2.f32 %v910_v34  ;;  %v904_v49 = vmul.f32 1.442695, %v901_v38  ;;  %v1360_v53 = vpop.eup %1359 }
 0x1fc   : > { %v649_v63 = vadd.f32 %v1358_v50, %v641_v45  ;;  %1369 = vpow2.f32 %v918_v36  ;;  %v912_v54 = vmul.f32 1.442695, %v909_v44  ;;  %v917_v56 = vsub.f32 %v884_v16, %v1708_v29  ;;  %v1362_v48 = vpop.eup %1361 }
 0x1fd   : > { %v695_v57 = vmul.f32 0.0, %v1360_v53  ;;  %1371 = vpow2.f32 %v898_v47  ;;  %v1716_v58 = vadd.f32 %v945_v30, %v941_v7  ;;  %v949_v20 = vsub.f32 %v1708_v29, %v1671_v28 }
 0x1fe   : > { %v657_v59 = vadd.f32 %v1362_v48, %v649_v63  ;;  %1373 = vpow2.f32 %v904_v49  ;;  %v920_v60 = vmul.f32 1.442695, %v917_v56  ;;  %v702_v61 = vsel %vm692_vm4, %v696_v51, %v698_v52 }
 0x1ff   : > { %v951_v62 = vand.u32 2147483647, %v949_v20  ;;  %v954_v0 = vmul.f32 1.442695, %v952_v46  ;;  %vm958_vm6 = vcmp.gt.f32.partialorder %v1694_v10, %v1656_v13  ;;  %1375 = vpow2.f32 %v912_v54 }
 0x200   : > { %v697_v1 = vadd.f32 %v695_v57, %v657_v59  ;;  %v699_v2 = vmul.f32 %v1360_v53, %v657_v59  ;;  %vm959_vm7 = vcmp.gt.f32.partialorder %v1708_v29, %v1671_v28  ;;  %v970_v4 = vmax.f32 %v1656_v13, %v1694_v10 }
 0x201   : > { %v953_v3 = vsub.f32 0.0, %v951_v62  ;;  %1377 = vpow2.f32 %v954_v0  ;;  %v971_v5 = vmax.f32 %v1671_v28, %v1708_v29  ;;  %v1181_v28 = vsel %vm978_vm8, 1.0, %v1467_v6 }
 0x202   : > { %1379 = vpow2.f32 %v920_v60  ;;  %v703_v7 = vsel %vm693_vm5, %v697_v1, %v699_v2  ;;  %v1182_v29 = vsel %vm979_vm9, 1.0, %v1467_v6  ;;  %v1001_v53 = vsel %vm984_vm10, %v1181_v28, 0.0 }
 0x203   : > { %v1364_v8 = vpop.eup %1363  ;;  %v956_v9 = vmul.f32 1.442695, %v953_v3  ;;  %v1002_v63 = vsel %vm984_vm10, %v1182_v29, 0.0  ;;  %v1013_v2 = vlaneseq }
 0x204   : > { %v1366_v11 = vpop.eup %1365  ;;  %v1003_v54 = vadd.f32 %v1002_v63, %v1001_v53 }
 0x205   : > { %v1368_v14 = vpop.eup %1367  ;;  %v906_v15 = vadd.f32 %v1366_v11, %v1364_v8  ;;  %1381 = vpow2.f32 %v956_v9  ;;  %v1014_v3 = vshrl.u32 %v1013_v2, 7 }
 0x206   : > { %v1370_v16 = vpop.eup %1369 }
 0x207   : > { %v1372_v18 = vpop.eup %1371  ;;  %v914_v19 = vadd.f32 %v1368_v14, %v906_v15  ;;  %vm1017_vm11 = vcmp.eq.s32.totalorder %v1014_v3, 0 }
 0x208   : > { %v1374_v21 = vpop.eup %1373 }
 0x209   : > { %v922_v22 = vadd.f32 %v1370_v16, %v914_v19  ;;  %v907_v23 = vadd.f32 %v1374_v21, %v1372_v18  ;;  %v1376_v24 = vpop.eup %1375 }
 0x20b   : > { %v1378_v25 = vpop.eup %1377  ;;  %v915_v26 = vadd.f32 %v1376_v24, %v907_v23 }
 0x20c   : > { %v1380_v27 = vpop.eup %1379  ;;  %v960_v30 = vmul.f32 %v1378_v25, %v702_v61  ;;  %v964_v31 = vmul.f32 %v1378_v25, %v922_v22 }
 0x20d   : > { %v923_v32 = vadd.f32 %v1380_v27, %v915_v26 }
 0x20e   : > { %v962_v55 = vadd.f32 %v960_v30, %v922_v22  ;;  %v966_v33 = vadd.f32 %v964_v31, %v702_v61 }
 0x20f   : > { %v1382_v34 = vpop.eup %1381 }
 0x210   : > { %v961_v35 = vmul.f32 %v1382_v34, %v703_v7  ;;  %v965_v36 = vmul.f32 %v1382_v34, %v923_v32  ;;  %v968_v12 = vsel %vm958_vm6, %v962_v55, %v966_v33 }
 0x211   : > { %1383 = vlog2.f32 %v968_v12 }
 0x212   : > { %v963_v37 = vadd.f32 %v961_v35, %v923_v32  ;;  %v967_v38 = vadd.f32 %v965_v36, %v703_v7 }
 0x214   : > { %v969_v39 = vsel %vm959_vm7, %v963_v37, %v967_v38 }
 0x215   : > { %1385 = vlog2.f32 %v969_v39 }
 0x21b   : > { %v1384_v42 = vpop.eup %1383 }
 0x21c   : > { %v973_v43 = vmul.f32 0.6931472, %v1384_v42 }
 0x21e   : > { %v976_v44 = vadd.f32 %v973_v43, %v970_v4  ;;  %v1016_v4 = vand.u32 127, %v1013_v2 }
 0x21f   : > { %v1386_v45 = vpop.eup %1385 }
 0x220   : > { %v975_v46 = vmul.f32 0.6931472, %v1386_v45  ;;  %v980_v47 = vsub.f32 %v976_v44, %v1697_v17  ;;  %vm1020_vm12 = vcmp.eq.s32.totalorder %v1016_v4, 1  ;;  %vm1018_vm13 = vcmp.eq.s32.totalorder %v1016_v4, 0 }
 0x221   : > { %vm1021_vm14 = vmand %vm1017_vm11, %vm1020_vm12 }
 0x222   : > { %v977_v50 = vadd.f32 %v975_v46, %v971_v5  ;;  %v982_v13 = vsel %vm978_vm8, %v980_v47, 0.0  ;;  %vm1019_vm15 = vmand %vm1017_vm11, %vm1018_vm13 }
 0x223   : > { %v985_v52 = vsel %vm984_vm10, %v982_v13, 0.0 }
 0x224   : > { %v981_v10 = vsub.f32 %v977_v50, %v1716_v58 }
 0x226   : > { %v983_v51 = vsel %vm979_vm9, %v981_v10, 0.0 }
 0x227   : > { %v986_v49 = vsel %vm984_vm10, %v983_v51, 0.0 }
 0x228   : > { %v987_v40 = vadd.f32 %v986_v49, %v985_v52 }
 0x22a   : > { %988 = vadd.xlane.f32.xlu0 %v987_v40 }
 0x22e   : > { %1004 = vadd.xlane.f32.xlu0 %v1003_v54 }
 0x2b7   : > { %v989_v17 = vpop.xlane.xlu0 %988 }
 0x2b8   : > { %v990_v56 = vrot.slane %v989_v17, 4 }
 0x2ba   : > { %v991_v41 = vadd.f32 %v990_v56, %v989_v17 }
 0x2bb   : > { %v1005_v48 = vpop.xlane.xlu0 %1004 }
 0x2bc   : > { %v992_v57 = vrot.slane %v991_v41, 2  ;;  %v1006_v58 = vrot.slane %v1005_v48, 4 }
 0x2be   : > { %v1007_v20 = vadd.f32 %v1006_v58, %v1005_v48  ;;  %v993_v59 = vadd.f32 %v992_v57, %v991_v41 }
 0x2c0   : > { %v1008_v60 = vrot.slane %v1007_v20, 2  ;;  %v994_v6 = vrot.slane %v993_v59, 1 }
 0x2c2   : > { %v1009_v61 = vadd.f32 %v1008_v60, %v1007_v20  ;;  %v995_v62 = vadd.f32 %v994_v6, %v993_v59 }
 0x2c4   : > { %1277 = vpush %v995_v62  ;;  %v1010_v0 = vrot.slane %v1009_v61, 1 }
 0x2c6   : > { %v1011_v1 = vadd.f32 %v1010_v0, %v1009_v61 }
 0x2c8   : > { %1279 = vpush %v1011_v1 }
 0x2f5   : > { %s1278_s29 = spop %1277 }
 0x2f6   : > { %v1024_v7 = vstv %s1278_s29 }
 0x2f9   : > { %s1280_s6 = spop %1279 }
 0x2fa   : > { %v1022_v5 = vstv %s1280_s6 }
 0x2fb   : > { %v1023_v8 = vsel %vm1021_vm14, %v1022_v5, 0.0 }
 0x2fc   : > { %v1025_v9 = vsel %vm1019_vm15, %v1024_v7, %v1023_v8 }
 0x2fd   : > { %1026 = vst [vmem:[%s246_s30] sm:$0xff] %v1025_v9 }
 0x2fe   : > { %1400 = shalt.err (!%p1397_p5)
}
 0x2ff   : > { %s1401_s14 = scalar_lea.hbm %s1748_s9, 128  ;;  %s1405_s24 = scalar_lea.hbm %s1799_s4, 256 }
 0x300   : > { %p1402_p6 = scmp.ne.s32.totalorder %s1748_s9, %s1401_s14  ;;  %p1406_p10 = scmp.lt.u32.totalorder %s1748_s9, %s1799_s4 }
 0x301   : > { %p1407_p11 = scmp.lt.u32.totalorder %s1405_s24, %s1401_s14  ;;  %p1409_p13 = scmp.lt.u32.totalorder %s1401_s14, %s1748_s9 }
 0x302   : > { %p1403_p7 = pnand %p1402_p6, %p1535_p4 }
 0x303   : > { %p1408_p12 = por %p1407_p11, %p1406_p10 }
 0x304   : > { %p1404_p9 = pneg %p1403_p7 }
 0x305   : > { %p1410_p0 = por %p1409_p13, %p1408_p12 }
 0x307   : > { %p1411_p1 = pnand %p1410_p0, %p1404_p9 }
 0x309   : > { %1414 = shalt.err (!%p1411_p1)
}
 0x30a   : > { %1281 = dma.vmem_to_hbm [thread:$0]  (%p1535_p4), %s1750_s5, 128, %s1748_s9, %s1028_s18  }
 0x30b PF: > { %p1287_p2 = scmp.ge.s32.totalorder %s1465_s20, 2  ;;  %s1054_s30 = sand.u32 1, %s1445_s15  }
 0x30c   : > { %s1055_s6 = scalar_lea.sflag [#allocation4], %s1054_s30 }
 0x30d   : > { %p1284_p3 = pnand %p1287_p2, %p1542_p8 }
 0x30f   : > { %1440 = dma.done.wait (!%p1284_p3), %s1055_s6, 128  }
 0x310   : > { %1442 = vsyncadd (!%p1284_p3), %s1055_s6, 4294967168  ;;  %s17_s20 = sadd.s32 1, %s1465_s20   ;;  %s1802_s15 = smov %s1449_s16 }
 0x311   : > { %p14_p5 = scmp.ge.s32.totalorder %s17_s20, 4   ;;  %s1803_s16 = smov %s1453_s17 }
 0x312   : > { %s1804_s17 = smov %s1548_s28  ;;  %s1805_s18 = smov %s1461_s19 }
 0x313   : > { %s1806_s19 = smov %s1808_s23  ;;  %16 = sbr.rel (!%p14_p5) target bundleno = 4 (0x4), region = 88 }
 0x31a   :  { %1060 = vsyncpa [#allocation4], 1 }
 0x31b   :  { %1062 = vsyncpa [#allocation4 + $0x1], 1 }

</bundles_post_ra>
